<compile_context>
chip_gen: v7x
topology: tpu7x:2x2x1
jax: 0.10.0
libtpu: 0.0.40
codegen_flags: <defaults>
</compile_context>

<pallas_src>
import functools

import jax
import jax.numpy as jnp
from jax.experimental import pallas as pl
from jax.experimental.pallas import tpu as pltpu


_FUSED_MAX_N = 512          # below this the single fused VMEM-resident kernel is used
_NEG_BIG = -1e30            # bias for lane-padded (fake) classes; safe only because the
                            # softmax epilogue stays in f32 (exp underflows to exactly 0)


def _round_up(x, m):
    return ((x + m - 1) // m) * m


# ---------------------------------------------------------------------------
# Kernels
# ---------------------------------------------------------------------------
def gcn_layer1_kernel(a_ref, xw1_ref, dr_ref, b1_ref, h_ref, acc_ref, *, tk, rhs_resident):
    """H_scaled[i-block] = D^{-1/2} relu( D^{-1/2} * (sum_k (A+I)[i,k] @ XW1s[k]) + b1 ).

    XW1s already carries the column-side D^{-1/2}.  The stored H is pre-scaled by the
    row-side D^{-1/2} so layer 2 can stream the raw (A+I) against it directly.
    """
    k = pl.program_id(1)

    @pl.when(k == 0)
    def _():
        acc_ref[...] = jnp.zeros_like(acc_ref)

    if rhs_resident:
        kk = pl.multiple_of(k * tk, tk)
        rhs = xw1_ref[pl.ds(kk, tk), :]          # resident operand: slice the k-block
    else:
        rhs = xw1_ref[...]                       # streamed (tk, hid_pad) block
    acc_ref[...] += jnp.dot(a_ref[...], rhs, preferred_element_type=jnp.float32)

    @pl.when(k == pl.num_programs(1) - 1)
    def _():
        dr = dr_ref[...]                                             # (tm, 1) f32 row scale
        h = jnp.maximum(dr * acc_ref[...] + b1_ref[...], 0.0)        # bias + ReLU in f32
        # TODO(synk): F.dropout(p=0.3) is training-only; eval mode => identity.
        h_ref[...] = (dr * h).astype(h_ref.dtype)                    # store D^{-1/2} H (bf16)


def gcn_layer2_kernel(a_ref, hs_ref, dr_ref, w2_ref, b2_ref, o_ref, acc_ref, *, tk,
                      rhs_resident):
    """O[i-block] = log_softmax( (D^{-1/2} * sum_k (A+I)[i,k] @ Hs[k]) @ W2p + b2p )."""
    k = pl.program_id(1)

    @pl.when(k == 0)
    def _():
        acc_ref[...] = jnp.zeros_like(acc_ref)

    if rhs_resident:
        kk = pl.multiple_of(k * tk, tk)
        rhs = hs_ref[pl.ds(kk, tk), :]
    else:
        rhs = hs_ref[...]
    acc_ref[...] += jnp.dot(a_ref[...], rhs, preferred_element_type=jnp.float32)

    @pl.when(k == pl.num_programs(1) - 1)
    def _():
        ah = dr_ref[...] * acc_ref[...]                              # (tm, 128) f32 == (A_hat @ H)
        o = jnp.dot(ah, w2_ref[...], preferred_element_type=jnp.float32) + b2_ref[...]
        m = jnp.max(o, axis=1, keepdims=True)
        z = o - m
        lse = jnp.log(jnp.sum(jnp.exp(z), axis=1, keepdims=True))    # pad lanes: exp(-1e30-m)==0
        o_ref[...] = z - lse


def gcn_fused_kernel(a_ref, xw1_ref, dr_ref, b1_ref, w2_ref, b2_ref, o_ref):
    """Small-N fast path: both layers in one grid=() kernel, everything VMEM-resident."""
    dr = dr_ref[...]                                                 # (n, 1) f32
    a = a_ref[...]                                                   # (n, n) bf16 (A + I)
    acc1 = jnp.dot(a, xw1_ref[...], preferred_element_type=jnp.float32)
    h = jnp.maximum(dr * acc1 + b1_ref[...], 0.0)
    # TODO(synk): F.dropout(p=0.3) is training-only; eval mode => identity.
    hs = (dr * h).astype(jnp.bfloat16)
    ah = dr * jnp.dot(a, hs, preferred_element_type=jnp.float32)
    o = jnp.dot(ah, w2_ref[...], preferred_element_type=jnp.float32) + b2_ref[...]
    m = jnp.max(o, axis=1, keepdims=True)
    z = o - m
    o_ref[...] = z - jnp.log(jnp.sum(jnp.exp(z), axis=1, keepdims=True))


# ---------------------------------------------------------------------------
# Tiling / VMEM helpers
# ---------------------------------------------------------------------------
def _vmem_limit_bytes():
    """Generation-aware scoped-VMEM limit (v7x: 64 MiB/TC, v5e/v6e: 128 MiB)."""
    try:
        cap = int(pltpu.get_tpu_info().vmem_capacity_bytes)
    except Exception:                       # conservative (v7x-sized) fallback
        cap = 64 * 1024 * 1024
    return min((cap * 3) // 4, 96 * 1024 * 1024)


def _choose_tiles(n):
    """Row/lane tiles for streaming A.  N is padded up; zero rows/cols are harmless."""
    n_pad = _round_up(n, 512)               # only used when n > _FUSED_MAX_N -> n_pad >= 1024
    tm = 512                                # >= 2 row tiles -> v7x megacore sharding
    # Largest multiple-of-128 divisor of n_pad, capped so the k axis has >= 2 steps and a
    # double-buffered A block stays <= ~8 MiB (512 x 4096 bf16 = 4 MiB per buffer).
    cap = min(4096, n_pad // 2)
    tk = 512
    for c in range(cap, 127, -128):
        if n_pad % c == 0:
            tk = c
            break
    return tm, tk, n_pad


def build_padded_adjacency(edge_index, num_nodes, n_pad):
    """Raw bf16 (A + I) built at padded size + f32 D^{-1/2} (normalization done in-kernel)."""
    src, dst = edge_index[0], edge_index[1]
    a = jnp.zeros((n_pad, n_pad), jnp.bfloat16)
    a = a.at[src, dst].set(1.0)
    a = a.at[dst, src].set(1.0)                      # treat graph as undirected (dedupes edges)
    idx = jnp.arange(num_nodes)
    a = a.at[idx, idx].add(1.0)                      # self-loops
    deg = jnp.sum(a, axis=1, dtype=jnp.float32)      # exact: 0/1 entries, f32 accumulation
    d_inv_sqrt = jnp.where(deg > 0, 1.0 / jnp.sqrt(deg), 0.0)   # padded rows -> 0
    return a, d_inv_sqrt


# ---------------------------------------------------------------------------
# Forward pass
# ---------------------------------------------------------------------------
def gcn_forward(edge_index, x, w1, b1, w2, b2):
    n, f_in = x.shape
    hidden = w1.shape[1]
    out_dim = w2.shape[1]
    hid_pad = 128 * pl.cdiv(hidden, 128)
    out_pad = 128 * pl.cdiv(out_dim, 128)

    fused = n <= _FUSED_MAX_N
    if fused:
        n_pad = _round_up(n, 8)
        tm = tk = None
    else:
        tm, tk, n_pad = _choose_tiles(n)

    a, d = build_padded_adjacency(edge_index, n, n_pad)
    d_col = d.reshape(n_pad, 1)

    # XW1 precomputed in XLA (tiny N x 128 matmul); fold in the column-side D^{-1/2};
    # lane-pad hidden to 128; bf16 for the streamed MXU product.  Biases / W2 stay f32.
    w1_p = jnp.zeros((f_in, hid_pad), jnp.float32).at[:, :hidden].set(w1.astype(jnp.float32))
    xw1 = d[:n, None] * (x.astype(jnp.float32) @ w1_p)
    xw1 = jnp.zeros((n_pad, hid_pad), jnp.float32).at[:n].set(xw1).astype(jnp.bfloat16)

    b1_p = jnp.zeros((1, hid_pad), jnp.float32).at[:, :hidden].set(
        b1.astype(jnp.float32).reshape(1, hidden))
    w2_p = jnp.zeros((hid_pad, out_pad), jnp.float32).at[:hidden, :out_dim].set(
        w2.astype(jnp.float32))
    b2_p = jnp.full((1, out_pad), _NEG_BIG, jnp.float32).at[:, :out_dim].set(
        b2.astype(jnp.float32).reshape(1, out_dim))

    # ---- small-N fast path: one fused, fully VMEM-resident kernel -------------------
    if fused:
        o_pad = pl.pallas_call(
            gcn_fused_kernel,
            out_shape=jax.ShapeDtypeStruct((n_pad, out_pad), jnp.float32),
        )(a, xw1, d_col, b1_p, w2_p, b2_p)
        return o_pad[:n, :out_dim]

    # ---- tiled path: stream A twice, keep the narrow operands resident --------------
    grid = (n_pad // tm, n_pad // tk)
    vmem_limit = _vmem_limit_bytes()
    rhs_bytes = n_pad * hid_pad * 2                     # bf16 XW1 / H footprint
    rhs_resident = (2 * rhs_bytes) <= (vmem_limit // 4) # keep resident only if comfortably small

    params = pltpu.CompilerParams(
        dimension_semantics=("parallel", "arbitrary"),
        vmem_limit_bytes=vmem_limit,
    )

    if rhs_resident:
        rhs_spec = pl.BlockSpec((n_pad, hid_pad), lambda i, k: (0, 0))   # DMA'd once, resident
    else:
        rhs_spec = pl.BlockSpec((tk, hid_pad), lambda i, k: (k, 0))      # streamed per k-step

    # ---- layer 1: H_scaled = D^{-1/2} relu(A_hat @ X @ W1 + b1) ----
    h = pl.pallas_call(
        functools.partial(gcn_layer1_kernel, tk=tk, rhs_resident=rhs_resident),
        out_shape=jax.ShapeDtypeStruct((n_pad, hid_pad), jnp.bfloat16),
        grid=grid,
        in_specs=[
            pl.BlockSpec((tm, tk), lambda i, k: (i, k)),        # A row x K tile (streamed)
            rhs_spec,                                           # XW1 (scaled, bf16)
            pl.BlockSpec((tm, 1), lambda i, k: (i, 0)),         # D^{-1/2} row slice
            pl.BlockSpec((1, hid_pad), lambda i, k: (0, 0)),    # b1 (padded)
        ],
        out_specs=pl.BlockSpec((tm, hid_pad), lambda i, k: (i, 0)),
        scratch_shapes=[pltpu.VMEM((tm, hid_pad), jnp.float32)],
        compiler_params=params,
        cost_estimate=pl.CostEstimate(
            flops=2 * n_pad * n_pad * hid_pad,
            transcendentals=0,
            bytes_accessed=2 * n_pad * n_pad + 4 * n_pad * hid_pad,
        ),
    )(a, xw1, d_col, b1_p)

    # ---- layer 2: out = log_softmax(A_hat @ H @ W2 + b2) ----
    o_pad = pl.pallas_call(
        functools.partial(gcn_layer2_kernel, tk=tk, rhs_resident=rhs_resident),
        out_shape=jax.ShapeDtypeStruct((n_pad, out_pad), jnp.float32),
        grid=grid,
        in_specs=[
            pl.BlockSpec((tm, tk), lambda i, k: (i, k)),          # A again (streamed)
            rhs_spec,                                             # H_scaled (bf16)
            pl.BlockSpec((tm, 1), lambda i, k: (i, 0)),           # D^{-1/2} row slice
            pl.BlockSpec((hid_pad, out_pad), lambda i, k: (0, 0)),# W2 padded (f32, resident)
            pl.BlockSpec((1, out_pad), lambda i, k: (0, 0)),      # b2 padded
        ],
        out_specs=pl.BlockSpec((tm, out_pad), lambda i, k: (i, 0)),
        scratch_shapes=[pltpu.VMEM((tm, hid_pad), jnp.float32)],
        compiler_params=params,
        cost_estimate=pl.CostEstimate(
            flops=2 * n_pad * n_pad * hid_pad + 2 * n_pad * hid_pad * out_pad,
            transcendentals=n_pad * out_pad,
            bytes_accessed=2 * n_pad * n_pad + 2 * n_pad * hid_pad + 4 * n_pad * out_pad,
        ),
    )(a, h, d_col, w2_p, b2_p)

    return o_pad[:n, :out_dim]


gcn_apply = jax.jit(gcn_forward)


# ---------------------------------------------------------------------------
# Pure-JAX reference (f32) for correctness checks
# ---------------------------------------------------------------------------
@jax.jit
def gcn_reference(edge_index, x, w1, b1, w2, b2):
    n = x.shape[0]
    src, dst = edge_index[0], edge_index[1]
    a = jnp.zeros((n, n), jnp.float32).at[src, dst].set(1.0).at[dst, src].set(1.0)
    a = a + jnp.eye(n, dtype=jnp.float32)
    deg = jnp.sum(a, axis=1)
    dis = jnp.where(deg > 0, 1.0 / jnp.sqrt(deg), 0.0)
    a_hat = a * dis[:, None] * dis[None, :]
    h = jnp.maximum(a_hat @ (x @ w1) + b1.reshape(1, -1), 0.0)
    o = a_hat @ (h @ w2) + b2.reshape(1, -1)
    return jax.nn.log_softmax(o, axis=1)


if __name__ == "__main__":
    # Small shapes consistent with the module: N people with per-person features.
    num_nodes, input_dim, hidden_dim, output_dim = 16, 8, 32, 4

    key = jax.random.PRNGKey(0)
    k_x, k_w1, k_w2, k_big = jax.random.split(key, 4)

    # data.people_features : [N, input_dim]
    x = jax.random.normal(k_x, (num_nodes, input_dim), jnp.float32)

    # data.connections : edge_index [2, E]  (deterministic ring + a few chords)
    src = jnp.arange(num_nodes, dtype=jnp.int32)
    dst = (src + 1) % num_nodes
    chords_src = jnp.array([0, 3, 5, 7], dtype=jnp.int32)
    chords_dst = jnp.array([8, 11, 13, 2], dtype=jnp.int32)
    edge_index = jnp.stack(
        [jnp.concatenate([src, chords_src]), jnp.concatenate([dst, chords_dst])], axis=0)

    def glorot(k, fan_in, fan_out):
        limit = jnp.sqrt(6.0 / (fan_in + fan_out))
        return jax.random.uniform(k, (fan_in, fan_out), jnp.float32, -limit, limit)

    w1 = glorot(k_w1, input_dim, hidden_dim)
    b1 = jnp.zeros((hidden_dim,), jnp.float32)
    w2 = glorot(k_w2, hidden_dim, output_dim)
    b2 = jnp.zeros((output_dim,), jnp.float32)

    # --- small graph (fused fast path) ---
    out = gcn_apply(edge_index, x, w1, b1, w2, b2)
    jax.block_until_ready(out)
    ref = gcn_reference(edge_index, x, w1, b1, w2, b2)
    assert out.shape == (num_nodes, output_dim)
    assert jnp.allclose(jnp.sum(jnp.exp(out), axis=1), 1.0, atol=1e-4)
    assert jnp.allclose(out, ref, atol=0.1), float(jnp.max(jnp.abs(out - ref)))

    # --- larger, awkward-sized graph: exercises the tiled / padded path (grid (2, 2)) ---
    n_big = 1000
    kb_x, kb_s, kb_d = jax.random.split(k_big, 3)
    x_big = jax.random.normal(kb_x, (n_big, input_dim), jnp.float32)
    ring_s = jnp.arange(n_big, dtype=jnp.int32)
    ring_d = (ring_s + 1) % n_big
    chord_s = jax.random.randint(kb_s, (4 * n_big,), 0, n_big, dtype=jnp.int32)
    chord_d = jax.random.randint(kb_d, (4 * n_big,), 0, n_big, dtype=jnp.int32)
    ei_big = jnp.stack([jnp.concatenate([ring_s, chord_s]),
                        jnp.concatenate([ring_d, chord_d])], axis=0)

    out_big = gcn_apply(ei_big, x_big, w1, b1, w2, b2)
    jax.block_until_ready(out_big)
    ref_big = gcn_reference(ei_big, x_big, w1, b1, w2, b2)
    assert out_big.shape == (n_big, output_dim)
    assert jnp.allclose(jnp.sum(jnp.exp(out_big), axis=1), 1.0, atol=1e-4)
    assert jnp.allclose(out_big, ref_big, atol=0.1), float(jnp.max(jnp.abs(out_big - ref_big)))

    print("KERNEL_OK")
</pallas_src>

<mosaic_0001>
module attributes {stable_mosaic.version = 11 : i64} {
  func.func @gcn_fused_kernel(%arg0: memref<16x16xbf16, #tpu.memory_space<vmem>>, %arg1: memref<16x128xbf16, #tpu.memory_space<vmem>>, %arg2: memref<16x1xf32, #tpu.memory_space<vmem>>, %arg3: memref<1x128xf32, #tpu.memory_space<vmem>>, %arg4: memref<128x128xf32, #tpu.memory_space<vmem>>, %arg5: memref<1x128xf32, #tpu.memory_space<vmem>>, %arg6: memref<16x128xf32, #tpu.memory_space<vmem>>) attributes {dimension_semantics = [], scalar_prefetch = 0 : i64, scratch_operands = 0 : i64, tpu.core_type = #tpu.core_type<tc>} {
    %c0 = arith.constant 0 : index
    %c0_0 = arith.constant 0 : index
    %0 = vector.load %arg2[%c0, %c0_0] : memref<16x1xf32, #tpu.memory_space<vmem>>, vector<16x1xf32>
    %c0_1 = arith.constant 0 : index
    %c0_2 = arith.constant 0 : index
    %1 = vector.load %arg0[%c0_1, %c0_2] : memref<16x16xbf16, #tpu.memory_space<vmem>>, vector<16x16xbf16>
    %c0_3 = arith.constant 0 : index
    %c0_4 = arith.constant 0 : index
    %2 = vector.load %arg1[%c0_3, %c0_4] : memref<16x128xbf16, #tpu.memory_space<vmem>>, vector<16x128xbf16>
    %cst = arith.constant dense<0.000000e+00> : vector<16x128xf32>
    %3 = tpu.matmul %1, %2, %cst {dimension_numbers = #tpu.dot_dimension_numbers<[1], [0], [0], [1], [0, 0, 1, 1], [], []>} : vector<16x16xbf16>, vector<16x128xbf16>, vector<16x128xf32> -> vector<16x128xf32>
    %4 = vector.broadcast %0 : vector<16x1xf32> to vector<16x128xf32>
    %5 = arith.mulf %4, %3 : vector<16x128xf32>
    %c0_5 = arith.constant 0 : index
    %c0_6 = arith.constant 0 : index
    %6 = vector.load %arg3[%c0_5, %c0_6] : memref<1x128xf32, #tpu.memory_space<vmem>>, vector<1x128xf32>
    %7 = vector.broadcast %6 : vector<1x128xf32> to vector<16x128xf32>
    %8 = arith.addf %5, %7 : vector<16x128xf32>
    %cst_7 = arith.constant 0.000000e+00 : f32
    %9 = vector.broadcast %cst_7 : f32 to vector<16x128xf32>
    %10 = arith.maximumf %8, %9 : vector<16x128xf32>
    %11 = vector.broadcast %0 : vector<16x1xf32> to vector<16x128xf32>
    %12 = arith.mulf %11, %10 : vector<16x128xf32>
    %13 = arith.truncf %12 : vector<16x128xf32> to vector<16x128xbf16>
    %cst_8 = arith.constant dense<0.000000e+00> : vector<16x128xf32>
    %14 = tpu.matmul %1, %13, %cst_8 {dimension_numbers = #tpu.dot_dimension_numbers<[1], [0], [0], [1], [0, 0, 1, 1], [], []>} : vector<16x16xbf16>, vector<16x128xbf16>, vector<16x128xf32> -> vector<16x128xf32>
    %15 = vector.broadcast %0 : vector<16x1xf32> to vector<16x128xf32>
    %16 = arith.mulf %15, %14 : vector<16x128xf32>
    %c0_9 = arith.constant 0 : index
    %c0_10 = arith.constant 0 : index
    %17 = vector.load %arg4[%c0_9, %c0_10] : memref<128x128xf32, #tpu.memory_space<vmem>>, vector<128x128xf32>
    %cst_11 = arith.constant dense<0.000000e+00> : vector<16x128xf32>
    %18 = tpu.matmul %16, %17, %cst_11 {dimension_numbers = #tpu.dot_dimension_numbers<[1], [0], [0], [1], [0, 0, 1, 1], [], []>} : vector<16x128xf32>, vector<128x128xf32>, vector<16x128xf32> -> vector<16x128xf32>
    %c0_12 = arith.constant 0 : index
    %c0_13 = arith.constant 0 : index
    %19 = vector.load %arg5[%c0_12, %c0_13] : memref<1x128xf32, #tpu.memory_space<vmem>>, vector<1x128xf32>
    %20 = vector.broadcast %19 : vector<1x128xf32> to vector<16x128xf32>
    %21 = arith.addf %18, %20 : vector<16x128xf32>
    %cst_14 = arith.constant dense<0xFF800000> : vector<16xf32>
    %22 = vector.multi_reduction <maximumf>, %21, %cst_14 [1] : vector<16x128xf32> to vector<16xf32>
    %23 = vector.shape_cast %22 : vector<16xf32> to vector<16x1xf32>
    %24 = vector.broadcast %23 : vector<16x1xf32> to vector<16x128xf32>
    %25 = arith.subf %21, %24 : vector<16x128xf32>
    %26 = math.exp %25 : vector<16x128xf32>
    %cst_15 = arith.constant dense<0.000000e+00> : vector<16xf32>
    %27 = vector.multi_reduction <add>, %26, %cst_15 [1] : vector<16x128xf32> to vector<16xf32>
    %28 = vector.shape_cast %27 : vector<16xf32> to vector<16x1xf32>
    %29 = math.log %28 : vector<16x1xf32>
    %30 = vector.broadcast %29 : vector<16x1xf32> to vector<16x128xf32>
    %31 = arith.subf %25, %30 : vector<16x128xf32>
    %c0_16 = arith.constant 0 : index
    %c0_17 = arith.constant 0 : index
    %32 = vector.load %arg6[%c0_16, %c0_17] : memref<16x128xf32, #tpu.memory_space<vmem>>, vector<16x128xf32>
    tpu.vector_store %arg6[%c0_16, %c0_17], %31 {strides = array<i32>} : memref<16x128xf32, #tpu.memory_space<vmem>>, vector<16x128xf32>,
    return
  }
}

</mosaic_0001>

<bundles_post_ra>
// kernel: gcn_forward.1
= control target key start
LH: loop header
LB: loop body
LE: loop exit
PB: predicated region body
PF: predicated region fallthrough
CT: control target
= control target key end

     0   :  { %v400_v0 = vmov 0.0   ;;  %vm401_vm0 = vmmov 0   ;;  %v402_v3 = vmov 0   ;;  %vm41_vm1 = vcmask 130048   ;;  %s516_s1 = inlined_call_operand.vmem [shape: bf16[16,128], index: 1, kind: input, shape index: {}]   ;;  %s517_s0 = inlined_call_operand.vmem [shape: bf16[16,16], index: 0, kind: input, shape index: {}]   ;;  %s518_s2 = inlined_call_operand.vmem [shape: f32[16,1], index: 2, kind: input, shape index: {}]   ;;  %s519_s4 = inlined_call_operand.vmem [shape: f32[128,128], index: 4, kind: input, shape index: {}]   ;;  %s520_s3 = inlined_call_operand.vmem [shape: f32[1,128], index: 3, kind: input, shape index: {}]   ;;  %s521_s5 = inlined_call_operand.vmem [shape: f32[1,128], index: 5, kind: input, shape index: {}]   ;;  %s522_s6 = inlined_call_operand.vmem [shape: f32[16,128], index: 6, kind: output, shape index: {}]  }
   0x1   :  { %307 = vmatprep.subr.bf16.mxu1 %v400_v0  ;;  %v390_v1 = vld [vmem:[%s516_s1] sm:$0xff]   ;;  %309 = vmatprep.mubr.msk.bf16.mxu1 %vm401_vm0, %v400_v0  ;;  %v25_v5 = vld [vmem:[%s518_s2 + $0x8] sm:$0xff]  ;;  %v157_v8 = vld [vmem:[%s519_s4 + $0x10] sm:$0xff] }
   0x2   :  { %v444_v2 = vld [vmem:[%s517_s0] sm:$0xff]   ;;  %389 = vset.pattern.permute.xlu0 %v402_v3  ;;  %308 = vmatpush3.bf16.msra.mxu1 %v390_v1  ;;  %v156_v7 = vld [vmem:[%s519_s4 + $0x8] sm:$0xff]  ;;  %v158_v10 = vld [vmem:[%s519_s4 + $0x18] sm:$0xff] }
   0x3   :  { %v24_v4 = vld [vmem:[%s518_s2] sm:$0xff]  ;;  %313 = vmatprep.subr.bf16.mxu1 %v400_v0  ;;  %v358_v11 = vpack.c.bf16 %v158_v10, %v157_v8  ;;  %v160_v13 = vld [vmem:[%s519_s4 + $0x28] sm:$0xff]  ;;  %v161_v15 = vld [vmem:[%s519_s4 + $0x30] sm:$0xff] }
   0x4   :  { %88 = vperm.xlu0 %389, %v24_v4   ;;  %v155_v6 = vld [vmem:[%s519_s4] sm:$0xff]  ;;  %v162_v16 = vld [vmem:[%s519_s4 + $0x38] sm:$0xff]  ;;  %v164_v19 = vld [vmem:[%s519_s4 + $0x48] sm:$0xff] }
   0x5   :  { %310 = vmatmul.mubr.msk.bf16.vlgmr.msra.gmra.mrb[0].mxu1 %vm41_vm1, %v444_v2  ;;  %v354_v9 = vpack.c.bf16 %v156_v7, %v155_v6  ;;  %v159_v12 = vld [vmem:[%s519_s4 + $0x20] sm:$0xff]  ;;  %v366_v17 = vpack.c.bf16 %v162_v16, %v161_v15  ;;  %v165_v21 = vld [vmem:[%s519_s4 + $0x50] sm:$0xff]  ;;  %v166_v22 = vld [vmem:[%s519_s4 + $0x58] sm:$0xff] }
   0x6   :  { %315 = vmatprep.mubr.msk.bf16.mxu1 %vm401_vm0, %v400_v0  ;;  %v362_v14 = vpack.c.bf16 %v160_v13, %v159_v12  ;;  %v163_v18 = vld [vmem:[%s519_s4 + $0x40] sm:$0xff]  ;;  %v374_v23 = vpack.c.bf16 %v166_v22, %v165_v21  ;;  %v168_v25 = vld [vmem:[%s519_s4 + $0x68] sm:$0xff]  ;;  %v169_v43 = vld [vmem:[%s519_s4 + $0x70] sm:$0xff] }
   0x7   :  { %355 = vmatprep.subr.bf16.mxu0 %v354_v9  ;;  %v370_v20 = vpack.c.bf16 %v164_v19, %v163_v18  ;;  %v167_v24 = vld [vmem:[%s519_s4 + $0x60] sm:$0xff]  ;;  %v170_v44 = vld [vmem:[%s519_s4 + $0x78] sm:$0xff] }
   0x8   :  { %93 = vperm.xlu0 %389, %v25_v5   ;;  %357 = vmatpush3.bf16.msra.mxu0 %v354_v9  ;;  %v378_v26 = vpack.c.bf16 %v168_v25, %v167_v24  ;;  %v282_v29 = vld [vmem:[%s520_s3] ss:$0 sm:$0xff]  ;;  %v382_v45 = vpack.c.bf16 %v170_v44, %v169_v43 }
   0x9   :  { %359 = vmatprep.subr.bf16.mxu0 %v358_v11  ;;  %v284_v52 = vld [vmem:[%s521_s5] ss:$0 sm:$0xff] }
   0xc   :  { %361 = vmatpush3.bf16.msra.mxu0 %v358_v11 }
   0xd   :  { %363 = vmatprep.subr.bf16.mxu0 %v362_v14 }
  0x10   :  { %365 = vmatpush3.bf16.msra.mxu0 %v362_v14 }
  0x11   :  { %367 = vmatprep.subr.bf16.mxu0 %v366_v17 }
  0x14   :  { %369 = vmatpush3.bf16.msra.mxu0 %v366_v17 }
  0x15   :  { %371 = vmatprep.subr.bf16.mxu0 %v370_v20 }
  0x18   :  { %373 = vmatpush3.bf16.msra.mxu0 %v370_v20 }
  0x19   :  { %375 = vmatprep.subr.bf16.mxu0 %v374_v23 }
  0x1c   :  { %377 = vmatpush3.bf16.msra.mxu0 %v374_v23 }
  0x1d   :  { %379 = vmatprep.subr.bf16.mxu0 %v378_v26 }
  0x20   :  { %381 = vmatpush3.bf16.msra.mxu0 %v378_v26 }
  0x21   :  { %383 = vmatprep.subr.bf16.mxu0 %v382_v45 }
  0x24   :  { %385 = vmatpush3.bf16.msra.mxu0 %v382_v45 }
  0x83   :  { %v89_v27 = vpop.permute.xlu0 %88 }
  0x87   :  { %v94_v32 = vpop.permute.xlu0 %93 }
  0xd8   :  { %v79_v28 = vpop.f32.mrb[0].mxu1 }
  0xd9   :  { %v96_v30 = vmul.f32 %v89_v27, %v79_v28  ;;  %v311_v31 = vpop.f32.mrb[1].mxu1 }
  0xda   :  { %v82_v33 = vpop.f32.mrb[2].mxu1 }
  0xdb   :  { %v105_v34 = vadd.f32 %v282_v29, %v96_v30  ;;  %v97_v35 = vmul.f32 %v94_v32, %v82_v33  ;;  %v312_v36 = vpop.f32.mrb[3].mxu1 }
  0xdd   :  { %v107_v37 = vmax.f32 %v105_v34, 0.0  ;;  %v106_v38 = vadd.f32 %v282_v29, %v97_v35 }
  0xdf   :  { %v108_v39 = vmax.f32 %v106_v38, 0.0  ;;  %v109_v40 = vmul.f32 %v107_v37, %v89_v27 }
  0xe1   :  { %v110_v41 = vmul.f32 %v108_v39, %v94_v32 }
  0xe3   :  { %v111_v42 = vpack.c.bf16 %v110_v41, %v109_v40 }
  0xe5   :  { %314 = vmatpush3.bf16.msra.mxu1 %v111_v42 }
  0xe8   :  { %316 = vmatmul.mubr.msk.bf16.vlgmr.msra.gmra.mrb[4].mxu1 %vm41_vm1, %v444_v2 }
 0x1bb   :  { %v146_v46 = vpop.f32.mrb[4].mxu1 }
 0x1bc   :  { %v317_v47 = vpop.f32.mrb[5].mxu1  ;;  %v153_v48 = vmul.f32 %v146_v46, %v89_v27 }
 0x1bd   :  { %v149_v49 = vpop.f32.mrb[6].mxu1 }
 0x1be   :  { %v154_v50 = vmul.f32 %v149_v49, %v94_v32  ;;  %351 = vmatprep.mubr.f32.mxu0 %v153_v48  ;;  %v318_v51 = vpop.f32.mrb[7].mxu1 }
 0x1c0   :  { %352 = vmatmul.mubr.f32.vlgmr.msra.gmra.mrb[0].mxu0 %v154_v50 }
 0x293   :  { %v353_v53 = vpop.f32.mrb[0].mxu0 }
 0x294   :  { %v244_v54 = vpop.f32.mrb[1].mxu0  ;;  %v250_v56 = vadd.f32 %v353_v53, %v284_v52 }
 0x295   :  { %v245_v55 = vadd.f32 %v284_v52, %v244_v54 }
 0x297   :  { %253 = vmax.xlane.f32.xlu1 %v245_v55 }
 0x29b   :  { %255 = vmax.xlane.f32.xlu1 %v250_v56 }
 0x324   :  { %v254_v57 = vpop.xlane.xlu1 %253 }
 0x325   :  { %v257_v58 = vsub.f32 %v245_v55, %v254_v57 }
 0x327   :  { %v259_v59 = vmul.f32 1.442695, %v257_v58 }
 0x328   :  { %v256_v60 = vpop.xlane.xlu1 %255 }
 0x329   :  { %392 = vpow2.f32 %v259_v59  ;;  %v258_v61 = vsub.f32 %v250_v56, %v256_v60 }
 0x32b   :  { %v261_v62 = vmul.f32 1.442695, %v258_v61 }
 0x32d   :  { %394 = vpow2.f32 %v261_v62 }
 0x333   :  { %v393_v63 = vpop.eup %392 }
 0x334   :  { %263 = vadd.xlane.f32.xlu0 %v393_v63 }
 0x337   :  { %v395_v0 = vpop.eup %394 }
 0x338   :  { %265 = vadd.xlane.f32.xlu1 %v395_v0 }
 0x3c1   :  { %v264_v1 = vpop.xlane.xlu0 %263 }
 0x3c2   :  { %396 = vlog2.f32 %v264_v1 }
 0x3c5   :  { %v266_v2 = vpop.xlane.xlu1 %265 }
 0x3c6   :  { %398 = vlog2.f32 %v266_v2 }
 0x3cc   :  { %v397_v3 = vpop.eup %396 }
 0x3cd   :  { %v268_v4 = vmul.f32 0.6931472, %v397_v3 }
 0x3cf   :  { %v271_v5 = vsub.f32 %v257_v58, %v268_v4 }
 0x3d0   :  { %v399_v6 = vpop.eup %398 }
 0x3d1   :  { %273 = vst [vmem:[%s522_s6] sm:$0xff] %v271_v5  ;;  %v270_v7 = vmul.f32 0.6931472, %v399_v6 }
 0x3d3   :  { %v272_v8 = vsub.f32 %v258_v61, %v270_v7 }
 0x3d5   :  { %274 = vst [vmem:[%s522_s6 + $0x8] sm:$0xff] %v272_v8 }

</bundles_post_ra>
